<compile_context>
chip_gen: v6e
topology: v6e:2x2x1
jax: 0.10.0
libtpu: 0.0.40
codegen_flags: <defaults>
</compile_context>

<pallas_src>
import functools

import jax
import jax.numpy as jnp
from jax.experimental import pallas as pl
from jax.experimental.pallas import tpu as pltpu


def _round_up(a: int, b: int) -> int:
    return -(-a // b) * b


def _cdiv(a: int, b: int) -> int:
    return -(-a // b)


def _matmul_block_kernel(b_ref, x_ref, o_ref, *, compute_dtype):
    """One output tile computed with the full K extent (fast path / 2D path)."""
    b = b_ref[...]
    x = x_ref[...]
    if compute_dtype is not None:
        # Per-tile VPU cast right before the MXU: avoids a separate full-array
        # XLA cast pass over HBM in the wrapper.
        b = b.astype(compute_dtype)
        x = x.astype(compute_dtype)
    o_ref[...] = jnp.dot(b, x, preferred_element_type=jnp.float32).astype(o_ref.dtype)


def _matmul_kacc_kernel(b_ref, x_ref, o_ref, *, compute_dtype):
    """K-tiled path: accumulate directly into the resident f32 output block."""
    b = b_ref[...]
    x = x_ref[...]
    if compute_dtype is not None:
        b = b.astype(compute_dtype)
        x = x.astype(compute_dtype)
    part = jnp.dot(b, x, preferred_element_type=jnp.float32)

    @pl.when(pl.program_id(2) == 0)
    def _():
        o_ref[...] = part

    @pl.when(pl.program_id(2) != 0)
    def _():
        o_ref[...] += part


@functools.partial(
    jax.jit,
    static_argnames=(
        "tm", "tn", "tk", "k_single_max", "single_block_max_elems", "compute_dtype",
    ),
)
def linear_model_forward(
    B,
    x,
    *,
    tm: int = 256,
    tn: int = 512,
    tk: int = 512,
    k_single_max: int = 1024,
    single_block_max_elems: int = 1 << 20,
    compute_dtype=None,
):
    """yhat = B @ x  (B: (L, L), x: (L, N)) via Pallas TPU matmul.

    compute_dtype: optional in-kernel cast (e.g. jnp.bfloat16 on v6e/v7x) with
    f32 MXU accumulation; output is always f32 to match the PyTorch module.
    """
    M, K = B.shape
    K2, N = x.shape
    assert K == K2, "inner dimensions must match"
    out_dtype = jnp.float32

    in_bytes = jnp.dtype(B.dtype).itemsize
    cost = pl.CostEstimate(
        flops=2 * M * N * K,
        transcendentals=0,
        bytes_accessed=(M * K + K * N) * in_bytes + M * N * 4,
    )
    kern = functools.partial(_matmul_block_kernel, compute_dtype=compute_dtype)

    # ---- Fast path: one block = full arrays. No grid, no padding, no scratch.
    if M * K + K * N + M * N <= single_block_max_elems:
        return pl.pallas_call(
            kern,
            out_shape=jax.ShapeDtypeStruct((M, N), out_dtype),
            cost_estimate=cost,
        )(B, x)

    # Dtype-aware sublane multiple: 8 (f32), 16 (bf16), 32 (int8/fp8).
    sublane = 8 * max(1, 4 // in_bytes)

    def clamp(dim, tile, mult):
        t = min(tile, _round_up(dim, mult))
        return dim if t >= dim else t  # full extent is exempt from (8,128) rule

    tm_e = clamp(M, tm, sublane)
    tn_e = clamp(N, tn, 128)

    # Keep >= 2 parallel output tiles so both v7x TensorCores get work.
    if _cdiv(M, tm_e) * _cdiv(N, tn_e) < 2:
        if N >= 256:
            tn_e = _round_up(_cdiv(N, 2), 128)
        elif M >= 2 * sublane:
            tm_e = _round_up(_cdiv(M, 2), sublane)

    if K <= k_single_max:
        # ---- 2D path: full K per tile. j innermost => B block index depends
        # only on i, so Pallas skips the redundant B DMA across N tiles.
        grid = (_cdiv(M, tm_e), _cdiv(N, tn_e))
        return pl.pallas_call(
            kern,
            out_shape=jax.ShapeDtypeStruct((M, N), out_dtype),
            grid_spec=pltpu.PrefetchScalarGridSpec(
                num_scalar_prefetch=0,
                grid=grid,
                in_specs=[
                    pl.BlockSpec((tm_e, K), lambda i, j: (i, 0)),
                    pl.BlockSpec((K, tn_e), lambda i, j: (0, j)),
                ],
                out_specs=pl.BlockSpec((tm_e, tn_e), lambda i, j: (i, j)),
            ),
            compiler_params=pltpu.CompilerParams(
                dimension_semantics=("parallel", "parallel"),
            ),
            cost_estimate=cost,
        )(B, x)

    # ---- 3D path: K tiled (innermost grid axis), accumulate into the resident
    # f32 output block.  Only K is zero-padded (required for correctness);
    # M/N remainders are handled by Pallas boundary blocks.
    tk_e = min(tk, _round_up(K, 128))
    Kp = _round_up(K, tk_e)
    if Kp != K:
        B = jnp.pad(B, ((0, 0), (0, Kp - K)))
        x = jnp.pad(x, ((0, Kp - K), (0, 0)))

    kern3 = functools.partial(_matmul_kacc_kernel, compute_dtype=compute_dtype)
    grid = (_cdiv(M, tm_e), _cdiv(N, tn_e), Kp // tk_e)
    return pl.pallas_call(
        kern3,
        out_shape=jax.ShapeDtypeStruct((M, N), out_dtype),
        grid_spec=pltpu.PrefetchScalarGridSpec(
            num_scalar_prefetch=0,
            grid=grid,
            in_specs=[
                # NOTE: with k innermost, B tiles are re-fetched for every j.
                pl.BlockSpec((tm_e, tk_e), lambda i, j, k: (i, k)),
                pl.BlockSpec((tk_e, tn_e), lambda i, j, k: (k, j)),
            ],
            out_specs=pl.BlockSpec((tm_e, tn_e), lambda i, j, k: (i, j)),
        ),
        compiler_params=pltpu.CompilerParams(
            dimension_semantics=("parallel", "parallel", "arbitrary"),
        ),
        cost_estimate=cost,
    )(B, x)


if __name__ == "__main__":
    key = jax.random.PRNGKey(0)

    # --- Case 1: the actual LinearModel shape (L=32, batch of 16 columns). ---
    # Hits the no-grid fast path: one DMA + one MXU pass, no padding.
    L1, N1 = 32, 16
    k1b, k1x = jax.random.split(key)
    B1 = jax.random.normal(k1b, (L1, L1), dtype=jnp.float32)  # self.B parameter
    x1 = jax.random.normal(k1x, (L1, N1), dtype=jnp.float32)
    y1 = linear_model_forward(B1, x1)
    jax.block_until_ready(y1)
    assert y1.shape == (L1, N1)
    assert jnp.allclose(y1, B1 @ x1, atol=1e-4, rtol=1e-4)

    # --- Case 2: 2D tiled path (force tiling; K fits in a single tile). ------
    L2, N2 = 256, 512
    k2b, k2x = jax.random.split(jax.random.PRNGKey(1))
    B2 = jax.random.normal(k2b, (L2, L2), dtype=jnp.float32)
    x2 = jax.random.normal(k2x, (L2, N2), dtype=jnp.float32)
    y2 = linear_model_forward(B2, x2, single_block_max_elems=0)
    jax.block_until_ready(y2)
    assert jnp.allclose(y2, B2 @ x2, atol=1e-3, rtol=1e-3)

    # bf16 compute (in-kernel per-tile cast, f32 accumulation).
    y2_bf16 = linear_model_forward(
        B2, x2, single_block_max_elems=0, compute_dtype=jnp.bfloat16
    )
    jax.block_until_ready(y2_bf16)
    ref2_bf16 = jnp.dot(
        B2.astype(jnp.bfloat16),
        x2.astype(jnp.bfloat16),
        preferred_element_type=jnp.float32,
    )
    assert jnp.allclose(y2_bf16, ref2_bf16, atol=5e-2, rtol=2e-2)

    # --- Case 3: 3D K-tiled path (small tk threshold to exercise it). --------
    y3 = linear_model_forward(
        B2, x2, single_block_max_elems=0, k_single_max=128, tk=128
    )
    jax.block_until_ready(y3)
    assert jnp.allclose(y3, B2 @ x2, atol=1e-3, rtol=1e-3)

    # --- Case 4: non-(8,128)-divisible M/N handled via boundary blocks. ------
    L4, N4 = 200, 300
    k4b, k4x = jax.random.split(jax.random.PRNGKey(2))
    B4 = jax.random.normal(k4b, (L4, L4), dtype=jnp.float32)
    x4 = jax.random.normal(k4x, (L4, N4), dtype=jnp.float32)
    y4 = linear_model_forward(B4, x4, single_block_max_elems=0)
    jax.block_until_ready(y4)
    assert y4.shape == (L4, N4)
    assert jnp.allclose(y4, B4 @ x4, atol=1e-3, rtol=1e-3)

    # --- Case 5: 3D path with K not a tile multiple (exercises K zero-pad). --
    L5, N5 = 320, 256
    k5b, k5x = jax.random.split(jax.random.PRNGKey(3))
    B5 = jax.random.normal(k5b, (L5, L5), dtype=jnp.float32)
    x5 = jax.random.normal(k5x, (L5, N5), dtype=jnp.float32)
    y5 = linear_model_forward(
        B5, x5, single_block_max_elems=0, k_single_max=128, tk=128
    )
    jax.block_until_ready(y5)
    assert jnp.allclose(y5, B5 @ x5, atol=1e-3, rtol=1e-3)

    print("KERNEL_OK")
</pallas_src>

<mosaic_0001>
module attributes {stable_mosaic.version = 11 : i64} {
  func.func @_matmul_block_kernel(%arg0: memref<32x32xf32, #tpu.memory_space<vmem>>, %arg1: memref<32x16xf32, #tpu.memory_space<vmem>>, %arg2: memref<32x16xf32, #tpu.memory_space<vmem>>) attributes {dimension_semantics = [], scalar_prefetch = 0 : i64, scratch_operands = 0 : i64, tpu.core_type = #tpu.core_type<tc>} {
    %c0 = arith.constant 0 : index
    %c0_0 = arith.constant 0 : index
    %0 = vector.load %arg0[%c0, %c0_0] : memref<32x32xf32, #tpu.memory_space<vmem>>, vector<32x32xf32>
    %c0_1 = arith.constant 0 : index
    %c0_2 = arith.constant 0 : index
    %1 = vector.load %arg1[%c0_1, %c0_2] : memref<32x16xf32, #tpu.memory_space<vmem>>, vector<32x16xf32>
    %cst = arith.constant dense<0.000000e+00> : vector<32x16xf32>
    %2 = tpu.matmul %0, %1, %cst {dimension_numbers = #tpu.dot_dimension_numbers<[1], [0], [0], [1], [0, 0, 1, 1], [], []>} : vector<32x32xf32>, vector<32x16xf32>, vector<32x16xf32> -> vector<32x16xf32>
    %c0_3 = arith.constant 0 : index
    %c0_4 = arith.constant 0 : index
    %3 = vector.load %arg2[%c0_3, %c0_4] : memref<32x16xf32, #tpu.memory_space<vmem>>, vector<32x16xf32>
    tpu.vector_store %arg2[%c0_3, %c0_4], %2 {strides = array<i32>} : memref<32x16xf32, #tpu.memory_space<vmem>>, vector<32x16xf32>,
    return
  }
}

</mosaic_0001>

<bundles_post_ra>
// kernel: linear_model_forward.1
= control target key start
LH: loop header
LB: loop body
LE: loop exit
PB: predicated region body
PF: predicated region fallthrough
CT: control target
= control target key end

     0   :  { %vm19_vm0 = vcmask 261120   ;;  %vm117_vm1 = vcmask 130048   ;;  %s211_s1 = inlined_call_operand.vmem [shape: f32[32,16], index: 1, kind: input, shape index: {}]   ;;  %s212_s0 = inlined_call_operand.vmem [shape: f32[32,32], index: 0, kind: input, shape index: {}]   ;;  %s213_s2 = inlined_call_operand.vmem [shape: f32[32,16], index: 2, kind: output, shape index: {}]  }
   0x1   :  { %v18_v0 = vld [vmem:[%s211_s1 + $0x18] sm:$0xff]  ;;  %v17_v1 = vld [vmem:[%s211_s1 + $0x10] sm:$0xff]  ;;  %v16_v2 = vld [vmem:[%s211_s1 + $0x8] sm:$0xff] }
   0x2   :  { %138 = vmatprep.subr.mxu0 %v18_v0  ;;  %152 = vmatprep.subr.mxu1 %v18_v0  ;;  %v15_v3 = vld [vmem:[%s211_s1] sm:$0xff]  ;;  %v13_v5 = vld [vmem:[%s212_s0 + $0x10] sm:$0xff]  ;;  %v12_v6 = vld [vmem:[%s212_s0 + $0x8] sm:$0xff] }
   0x3   :  { %139 = vmatpush3.msra.mxu0 %v18_v0  ;;  %156 = vmatpush3.msra.mxu1 %v18_v0  ;;  %v11_v4 = vld [vmem:[%s212_s0] sm:$0xff]  ;;  %v14_v7 = vld [vmem:[%s212_s0 + $0x18] sm:$0xff] }
   0x4   :  { %140 = vmatprep.subr.mxu0 %v17_v1  ;;  %153 = vmatprep.subr.mxu1 %v17_v1 }
   0x5   :  { %141 = vmatpush3.msra.mxu0 %v17_v1  ;;  %157 = vmatpush3.msra.mxu1 %v17_v1 }
   0x6   :  { %142 = vmatprep.subr.mxu0 %v16_v2  ;;  %154 = vmatprep.subr.mxu1 %v16_v2 }
   0x7   :  { %143 = vmatpush3.msra.mxu0 %v16_v2  ;;  %158 = vmatpush3.msra.mxu1 %v16_v2 }
   0x8   :  { %144 = vmatprep.subr.mxu0 %v15_v3  ;;  %155 = vmatprep.subr.mxu1 %v15_v3 }
   0x9   :  { %145 = vmatpush3.msra.mxu0 %v15_v3  ;;  %159 = vmatpush3.msra.mxu1 %v15_v3 }
   0xa   :  { %146 = vmatprep.mubr.msk.f32.mxu0 %vm19_vm0, %v11_v4  ;;  %149 = vmatprep.mubr.msk.f32.mxu1 %vm19_vm0, %v13_v5 }
   0xb   :  { %147 = vmatmul.mubr.msk.f32.vlgmr.msra.gmra.mxu0 %vm19_vm0, %v12_v6  ;;  %150 = vmatmul.mubr.msk.f32.vlgmr.msra.gmra.mxu1 %vm19_vm0, %v14_v7 }
  0xcb   :  { %v148_v8 = vpop.f32.mrf.mxu0  ;;  %v151_v9 = vpop.f32.mrf.mxu1 }
  0xcc   :  { %119 = vst.msk [vmem:[%s213_s2 + $0x8] sm:$0xff] %vm117_vm1, %v148_v8  ;;  %121 = vst.msk [vmem:[%s213_s2 + $0x18] sm:$0xff] %vm117_vm1, %v151_v9 }
  0xcd   :  { %v98_v10 = vpop.f32.mrf.mxu0  ;;  %v108_v11 = vpop.f32.mrf.mxu1 }
  0xce   :  { %118 = vst.msk [vmem:[%s213_s2] sm:$0xff] %vm117_vm1, %v98_v10  ;;  %120 = vst.msk [vmem:[%s213_s2 + $0x10] sm:$0xff] %vm117_vm1, %v108_v11 }

</bundles_post_ra>
